<compile_context>
chip_gen: v7x
topology: tpu7x:2x2x1
jax: 0.10.0
libtpu: 0.0.40
codegen_flags: <defaults>
</compile_context>

<pallas_src>
import functools

import jax
import jax.numpy as jnp
from jax.experimental import pallas as pl
from jax.experimental.pallas import tpu as pltpu


def _round_up(x: int, m: int) -> int:
    return -(-x // m) * m


def _layernorm_kernel(x_ref, a_ref, b_ref, o_ref, *, eps: float,
                      inv_n: float, inv_nm1: float):
    # x_ref: (TR, F) tile of rows; a_ref / b_ref: (1, F) scale / shift.
    x = x_ref[...].astype(jnp.float32)

    mean = jnp.sum(x, axis=-1, keepdims=True) * jnp.float32(inv_n)
    diff = x - mean
    # torch.std default is unbiased (Bessel's correction): divide by (N - 1).
    var = jnp.sum(diff * diff, axis=-1, keepdims=True) * jnp.float32(inv_nm1)
    std = jnp.sqrt(var)

    # Per-row reciprocal of (std + eps): exact (approx=False) to hold the 1e-5
    # tolerance; turns the (TR x F)-wide divide into a VALU multiply.
    inv = pl.reciprocal(std + jnp.float32(eps), approx=False)

    a = a_ref[...].astype(jnp.float32)
    b = b_ref[...].astype(jnp.float32)
    o_ref[...] = (diff * inv * a + b).astype(o_ref.dtype)


def _vmem_budget():
    """(working-set budget, vmem_limit_bytes), tuned per TPU generation."""
    try:
        cap = int(pltpu.get_tpu_info().vmem_capacity_bytes)
    except Exception:
        cap = 64 << 20  # conservative default (v7x per-TensorCore VMEM)
    if cap >= (96 << 20):          # v5e / v6e: 128 MiB physical VMEM
        return 48 << 20, 80 << 20
    return 24 << 20, 44 << 20      # v7x: 64 MiB per TensorCore


def _choose_row_tile(r: int, f: int, itemsize: int, budget: int) -> int:
    # Sublane multiple is dtype-aware (sub-32-bit dtypes pack along sublanes).
    sub = max(8, 32 // itemsize)
    if r <= sub:
        # Single block covering all rows (block dim == full array dim is legal
        # even when it is not a multiple of the sublane count).
        return r

    # Working set per tile row: double-buffered in + out tiles in the I/O
    # dtype, plus ~3 f32 temporaries (x_f32, diff, y) live in the kernel body.
    bytes_per_row = f * (4 * itemsize + 3 * 4)
    tr = max(sub, (budget // bytes_per_row) // sub * sub)

    # Bytes-based cap on the raw input tile (~8 MiB sweet spot); no fixed row
    # cap, so small-F tiles are allowed to grow to thousands of rows.
    tile_cap = max(sub, ((8 << 20) // (f * itemsize)) // sub * sub)
    tr = min(tr, tile_cap)

    # Never exceed the row count (keeps only the standard partial-last-block).
    tr = min(tr, (r // sub) * sub)

    # Prefer >= 4 grid steps (>= 2 per TensorCore on v7x megacore), else >= 2,
    # but never shrink a tile below ~2 MiB to get them.
    for steps in (4, 2):
        cand = _round_up(max(1, -(-r // steps)), sub)
        if cand * f * itemsize >= (2 << 20):
            tr = min(tr, cand)
            break
    return int(max(sub, tr))


def layer_norm(x, a_2, b_2, *, eps=1e-6, row_tile=None, vmem_limit_bytes=None):
    """x: [..., F]; a_2, b_2: [F]. Returns same shape/dtype as x."""
    orig_shape = x.shape
    f = int(orig_shape[-1])
    x2 = x.reshape(-1, f)
    r = int(x2.shape[0])
    itemsize = jnp.dtype(x.dtype).itemsize
    sub = max(8, 32 // itemsize)

    budget, default_limit = _vmem_budget()
    if vmem_limit_bytes is None:
        vmem_limit_bytes = default_limit

    if row_tile is not None:
        if r <= sub:
            tr = r
        else:
            tr = max(sub, min(_round_up(int(row_tile), sub), (r // sub) * sub))
    else:
        tr = _choose_row_tile(r, f, itemsize, budget)

    grid = (pl.cdiv(r, tr),)

    a2 = a_2.reshape(1, f)
    b2 = b_2.reshape(1, f)

    # F == 1: unbiased std of a single element is NaN (matches torch.std).
    inv_nm1 = (1.0 / (f - 1)) if f > 1 else float("inf")
    kernel = functools.partial(
        _layernorm_kernel, eps=float(eps), inv_n=1.0 / f, inv_nm1=inv_nm1)

    out = pl.pallas_call(
        kernel,
        out_shape=jax.ShapeDtypeStruct((r, f), x.dtype),
        grid_spec=pltpu.PrefetchScalarGridSpec(
            num_scalar_prefetch=0,
            grid=grid,
            in_specs=[
                # x tile: rows independent -> the partial last block's OOB rows
                # read unspecified data and their writes are dropped by Pallas.
                pl.BlockSpec((tr, f), lambda i: (i, 0)),
                # scale / shift: constant index_map -> fetched once, resident.
                pl.BlockSpec((1, f), lambda i: (0, 0)),
                pl.BlockSpec((1, f), lambda i: (0, 0)),
            ],
            out_specs=pl.BlockSpec((tr, f), lambda i: (i, 0)),
        ),
        compiler_params=pltpu.CompilerParams(
            dimension_semantics=("parallel",),
            vmem_limit_bytes=int(vmem_limit_bytes),
        ),
    )(x2, a2, b2)

    return out.reshape(orig_shape)


def _reference(x, a_2, b_2, eps):
    mean = jnp.mean(x, axis=-1, keepdims=True)
    diff = x - mean
    f = x.shape[-1]
    std = jnp.sqrt(jnp.sum(diff * diff, axis=-1, keepdims=True) / (f - 1))
    return a_2 * diff / (std + eps) + b_2


if __name__ == "__main__":
    key = jax.random.PRNGKey(0)
    eps = 1e-6

    # Case 1: batch=2, seq=8, features=32 (F < 128 exercises the full-F,
    # non-128-lane block path; 16 rows -> one 16-row tile).
    batch, seq, features = 2, 8, 32
    x = jax.random.normal(key, (batch, seq, features), dtype=jnp.float32)
    a_2 = jnp.ones((features,), dtype=jnp.float32)
    b_2 = jnp.zeros((features,), dtype=jnp.float32)

    y = layer_norm(x, a_2, b_2, eps=eps)
    y = jax.block_until_ready(y)
    y_ref = _reference(x, a_2, b_2, eps)
    assert jnp.allclose(y, y_ref, atol=1e-5, rtol=1e-5), "mismatch (case 1)"

    # Case 2: 15 rows with an explicit 8-row tile -> 2 grid steps, partial
    # last block (exercises Pallas boundary masking, no wrapper padding).
    x2 = jax.random.normal(jax.random.PRNGKey(0), (3, 5, features),
                           dtype=jnp.float32)
    y2 = layer_norm(x2, a_2, b_2, eps=eps, row_tile=8)
    y2 = jax.block_until_ready(y2)
    y2_ref = _reference(x2, a_2, b_2, eps)
    assert jnp.allclose(y2, y2_ref, atol=1e-5, rtol=1e-5), "mismatch (case 2)"

    # Case 3: F = 160 (not a multiple of 128) with non-trivial affine params
    # (exercises the full-F block with a masked last vreg and the scale/shift).
    f3 = 160
    x3 = jax.random.normal(jax.random.PRNGKey(1), (4, 10, f3), dtype=jnp.float32)
    a_3 = 1.0 + 0.1 * jnp.arange(f3, dtype=jnp.float32) / f3
    b_3 = 0.01 * jnp.arange(f3, dtype=jnp.float32)
    y3 = layer_norm(x3, a_3, b_3, eps=eps)
    y3 = jax.block_until_ready(y3)
    y3_ref = _reference(x3, a_3, b_3, eps)
    assert jnp.allclose(y3, y3_ref, atol=1e-5, rtol=1e-5), "mismatch (case 3)"

    print("KERNEL_OK")
</pallas_src>

<mosaic_0001>
module attributes {stable_mosaic.version = 11 : i64} {
  func.func @_layernorm_kernel(%arg0: i32, %arg1: memref<16x32xf32, #tpu.memory_space<vmem>>, %arg2: memref<1x32xf32, #tpu.memory_space<vmem>>, %arg3: memref<1x32xf32, #tpu.memory_space<vmem>>, %arg4: memref<16x32xf32, #tpu.memory_space<vmem>>) attributes {dimension_semantics = [#tpu.dimension_semantics<parallel>], iteration_bounds = array<i64: 1>, scalar_prefetch = 0 : i64, scratch_operands = 0 : i64, tpu.core_type = #tpu.core_type<tc>, window_params = [{transform_indices = @transform_0, window_bounds = array<i64: 16, 32>}, {pipeline_mode = #tpu.pipeline_mode<synchronous>, transform_indices = @transform_1, window_bounds = array<i64: 1, 32>}, {pipeline_mode = #tpu.pipeline_mode<synchronous>, transform_indices = @transform_2, window_bounds = array<i64: 1, 32>}, {transform_indices = @transform_3, window_bounds = array<i64: 16, 32>}]} {
    %c0 = arith.constant 0 : index
    %c0_0 = arith.constant 0 : index
    %0 = vector.load %arg1[%c0, %c0_0] : memref<16x32xf32, #tpu.memory_space<vmem>>, vector<16x32xf32>
    %cst = arith.constant dense<0.000000e+00> : vector<16xf32>
    %1 = vector.multi_reduction <add>, %0, %cst [1] : vector<16x32xf32> to vector<16xf32>
    %2 = vector.shape_cast %1 : vector<16xf32> to vector<16x1xf32>
    %cst_1 = arith.constant 3.125000e-02 : f32
    %3 = vector.broadcast %cst_1 : f32 to vector<16x1xf32>
    %4 = arith.mulf %2, %3 : vector<16x1xf32>
    %5 = vector.broadcast %4 : vector<16x1xf32> to vector<16x32xf32>
    %6 = arith.subf %0, %5 : vector<16x32xf32>
    %7 = arith.mulf %6, %6 : vector<16x32xf32>
    %cst_2 = arith.constant dense<0.000000e+00> : vector<16xf32>
    %8 = vector.multi_reduction <add>, %7, %cst_2 [1] : vector<16x32xf32> to vector<16xf32>
    %9 = vector.shape_cast %8 : vector<16xf32> to vector<16x1xf32>
    %cst_3 = arith.constant 0.0322580636 : f32
    %10 = vector.broadcast %cst_3 : f32 to vector<16x1xf32>
    %11 = arith.mulf %9, %10 : vector<16x1xf32>
    %12 = math.sqrt %11 : vector<16x1xf32>
    %cst_4 = arith.constant 9.99999997E-7 : f32
    %13 = vector.broadcast %cst_4 : f32 to vector<16x1xf32>
    %14 = arith.addf %12, %13 : vector<16x1xf32>
    %15 = tpu.reciprocal %14 : vector<16x1xf32> -> vector<16x1xf32>
    %c0_5 = arith.constant 0 : index
    %c0_6 = arith.constant 0 : index
    %16 = vector.load %arg2[%c0_5, %c0_6] : memref<1x32xf32, #tpu.memory_space<vmem>>, vector<1x32xf32>
    %c0_7 = arith.constant 0 : index
    %c0_8 = arith.constant 0 : index
    %17 = vector.load %arg3[%c0_7, %c0_8] : memref<1x32xf32, #tpu.memory_space<vmem>>, vector<1x32xf32>
    %18 = vector.broadcast %15 : vector<16x1xf32> to vector<16x32xf32>
    %19 = arith.mulf %6, %18 : vector<16x32xf32>
    %20 = vector.broadcast %16 : vector<1x32xf32> to vector<16x32xf32>
    %21 = arith.mulf %19, %20 : vector<16x32xf32>
    %22 = vector.broadcast %17 : vector<1x32xf32> to vector<16x32xf32>
    %23 = arith.addf %21, %22 : vector<16x32xf32>
    %c0_9 = arith.constant 0 : index
    %c0_10 = arith.constant 0 : index
    %24 = vector.load %arg4[%c0_9, %c0_10] : memref<16x32xf32, #tpu.memory_space<vmem>>, vector<16x32xf32>
    tpu.vector_store %arg4[%c0_9, %c0_10], %23 {strides = array<i32>} : memref<16x32xf32, #tpu.memory_space<vmem>>, vector<16x32xf32>,
    return
  }
  func.func @transform_0(%arg0: i32) -> (i32, i32) {
    %c0_i32 = arith.constant 0 : i32
    %c0_i32_0 = arith.constant 0 : i32
    return %arg0, %c0_i32 : i32, i32
  }
  func.func @transform_1(%arg0: i32) -> (i32, i32) {
    %c0_i32 = arith.constant 0 : i32
    %c0_i32_0 = arith.constant 0 : i32
    %c0_i32_1 = arith.constant 0 : i32
    return %c0_i32, %c0_i32_0 : i32, i32
  }
  func.func @transform_2(%arg0: i32) -> (i32, i32) {
    %c0_i32 = arith.constant 0 : i32
    %c0_i32_0 = arith.constant 0 : i32
    %c0_i32_1 = arith.constant 0 : i32
    return %c0_i32, %c0_i32_0 : i32, i32
  }
  func.func @transform_3(%arg0: i32) -> (i32, i32) {
    %c0_i32 = arith.constant 0 : i32
    %c0_i32_0 = arith.constant 0 : i32
    return %arg0, %c0_i32 : i32, i32
  }
}

</mosaic_0001>

<bundles_post_ra>
// kernel: tpu_custom_call.1
= control target key start
LH: loop header
LB: loop body
LE: loop exit
PB: predicated region body
PF: predicated region fallthrough
CT: control target
= control target key end

     0   :  { %8 = vsyncpa [#allocation3], 0  ;;  %s237_s0 = inlined_call_operand.hbm [shape: f32[16,32], index: 0, kind: input, shape index: {}]   ;;  %s238_s1 = inlined_call_operand.vmem [shape: f32[1,32], index: 1, kind: input, shape index: {}]   ;;  %s239_s2 = inlined_call_operand.vmem [shape: f32[1,32], index: 2, kind: input, shape index: {}]   ;;  %s240_s3 = inlined_call_operand.hbm [shape: f32[16,32], index: 3, kind: output, shape index: {}]  }
   0x1   :  { %9 = vsyncpa [#allocation4], 0  ;;  %s171_s12 = smov [#allocation2]   ;;  %s123_s16 = scalar_lea.hbm %s237_s0, 256 }
   0x2   :  { %s15_s13 = sshll.u32 %s171_s12, 4  ;;  %p124_p0 = scmp.ne.s32.totalorder %s237_s0, %s123_s16  ;;  %s16_s13 = int_to_ptr.vmem [resolvable:$true] %s15_s13 }
   0x3   :  { %p127_p1 = scmp.lt.u32.totalorder %s123_s16, %s237_s0 }
   0x5   :  { %p129_p2 = pnand %p127_p1, %p124_p0 }
   0x7   :  { %132 = shalt.err (!%p129_p2)
}
   0x8   :  { %s133_s21 = scalar_lea.vmem %s16_s13, 256  ;;  %p138_p4 = scmp.lt.s32.totalorder %s16_s13, %s16_s13 }
   0x9   :  { %p134_p3 = scmp.ne.s32.totalorder %s16_s13, %s133_s21  ;;  %p139_p5 = scmp.lt.s32.totalorder %s133_s21, %s133_s21 }
   0xb   :  { %p140_p6 = por %p139_p5, %p138_p4 }
   0xd   :  { %p141_p7 = pnand %p140_p6, %p134_p3 }
   0xf   :  { %144 = shalt.err (!%p141_p7)
}
  0x10   :  { %s172_s22 = smov 128   ;;  %s173_s23 = smov 8  }
  0x11   :  { %21 = dma.hbm_to_vmem [thread:$0]  %s237_s0, 256, %s16_s13, [#allocation3], %s172_s22, %s172_s22, %s173_s23  }
  0x12   :  { %167 = dma.done.wait [#allocation3], 256  }
  0x13   :  { %168 = vsyncadd [#allocation3], 4294967040  ;;  %vm31_vm0 = vcmask 261120   ;;  %v29_v0 = vld [vmem:[#allocation2] sm:$0xff]  ;;  %v30_v1 = vld [vmem:[#allocation2 + $0x8] sm:$0xff]  ;;  %s174_s29 = smov [#allocation5]  }
  0x14   :  { %v32_v2 = vsel %vm31_vm0, %v29_v0, 0.0  ;;  %v35_v3 = vsel %vm31_vm0, %v30_v1, 0.0  ;;  %v109_v31 = vld [vmem:[%s238_s1] ss:$0 sm:$0xff]  ;;  %s97_s30 = sshll.u32 %s174_s29, 4  ;;  %s98_s30 = int_to_ptr.vmem [resolvable:$true] %s97_s30 }
  0x15   :  { %33 = vadd.xlane.f32.xlu0 %v32_v2  ;;  %v110_v33 = vld [vmem:[%s239_s2] ss:$0 sm:$0xff]  ;;  %s145_s4 = scalar_lea.vmem %s98_s30, 256  ;;  %p150_p9 = scmp.lt.s32.totalorder %s98_s30, %s98_s30 }
  0x16   :  { %p146_p8 = scmp.ne.s32.totalorder %s98_s30, %s145_s4  ;;  %p151_p10 = scmp.lt.s32.totalorder %s145_s4, %s145_s4 }
  0x18   :  { %p152_p11 = por %p151_p10, %p150_p9 }
  0x19   :  { %36 = vadd.xlane.f32.xlu0 %v35_v3 }
  0x1a   :  { %p153_p12 = pnand %p152_p11, %p146_p8 }
  0xa2   :  { %v34_v4 = vpop.xlane.xlu0 %33 }
  0xa3   :  { %v38_v5 = vmul.f32 0.03125, %v34_v4 }
  0xa5   :  { %v40_v6 = vsub.f32 %v29_v0, %v38_v5 }
  0xa6   :  { %v37_v7 = vpop.xlane.xlu0 %36 }
  0xa7   :  { %v39_v8 = vmul.f32 0.03125, %v37_v7  ;;  %v42_v9 = vmul.f32 %v40_v6, %v40_v6 }
  0xa9   :  { %v41_v10 = vsub.f32 %v30_v1, %v39_v8  ;;  %v44_v11 = vsel %vm31_vm0, %v42_v9, 0.0 }
  0xaa   :  { %45 = vadd.xlane.f32.xlu1 %v44_v11 }
  0xab   :  { %v43_v12 = vmul.f32 %v41_v10, %v41_v10 }
  0xad   :  { %v47_v13 = vsel %vm31_vm0, %v43_v12, 0.0 }
  0xae   :  { %48 = vadd.xlane.f32.xlu1 %v47_v13 }
 0x137   :  { %v46_v14 = vpop.xlane.xlu1 %45 }
 0x138   :  { %v50_v15 = vmul.f32 0.032258064, %v46_v14 }
 0x13a   :  { %115 = vrsqrt.f32 %v50_v15  ;;  %vm54_vm1 = vcmp.eq.f32.partialorder %v50_v15, inf  ;;  %v57_v20 = vand.u32 2147483648, %v50_v15  ;;  %vm56_vm2 = vcmp.eq.f32.partialorder %v50_v15, 0.0 }
 0x13b   :  { %v49_v16 = vpop.xlane.xlu1 %48 }
 0x13c   :  { %v51_v17 = vmul.f32 0.032258064, %v49_v16 }
 0x13e   :  { %117 = vrsqrt.f32 %v51_v17  ;;  %vm61_vm3 = vcmp.eq.f32.partialorder %v51_v17, inf  ;;  %v64_v26 = vand.u32 2147483648, %v51_v17  ;;  %vm63_vm4 = vcmp.eq.f32.partialorder %v51_v17, 0.0 }
 0x144   :  { %v116_v18 = vpop.eup %115 }
 0x145   :  { %v53_v19 = vmul.f32 %v116_v18, %v50_v15 }
 0x147   :  { %v55_v21 = vsel %vm54_vm1, %v50_v15, %v53_v19 }
 0x148   :  { %v118_v22 = vpop.eup %117  ;;  %v58_v23 = vsel %vm56_vm2, %v57_v20, %v55_v21 }
 0x149   :  { %v66_v24 = vadd.f32 1e-06, %v58_v23  ;;  %v60_v25 = vmul.f32 %v118_v22, %v51_v17 }
 0x14b   :  { %119 = vrcp.f32 %v66_v24  ;;  %v62_v27 = vsel %vm61_vm3, %v51_v17, %v60_v25 }
 0x14c   :  { %v65_v28 = vsel %vm63_vm4, %v64_v26, %v62_v27 }
 0x14d   :  { %v67_v29 = vadd.f32 1e-06, %v65_v28 }
 0x14f   :  { %121 = vrcp.f32 %v67_v29 }
 0x155   :  { %v120_v30 = vpop.eup %119 }
 0x156   :  { %v72_v32 = vmul.f32 %v120_v30, %v40_v6 }
 0x158   :  { %v80_v34 = vmul.f32 %v109_v31, %v72_v32 }
 0x159   :  { %v122_v35 = vpop.eup %121 }
 0x15a   :  { %v73_v36 = vmul.f32 %v122_v35, %v41_v10  ;;  %v88_v37 = vadd.f32 %v110_v33, %v80_v34 }
 0x15c   :  { %v81_v38 = vmul.f32 %v109_v31, %v73_v36  ;;  %90 = vst.msk [vmem:[#allocation5] sm:$0xff] %vm31_vm0, %v88_v37 }
 0x15e   :  { %v89_v39 = vadd.f32 %v110_v33, %v81_v38 }
 0x160   :  { %91 = vst.msk [vmem:[#allocation5 + $0x8] sm:$0xff] %vm31_vm0, %v89_v39 }
 0x161   :  { %156 = shalt.err (!%p153_p12)
}
 0x162   :  { %s157_s5 = scalar_lea.hbm %s240_s3, 256 }
 0x163   :  { %p158_p13 = scmp.ne.s32.totalorder %s240_s3, %s157_s5  ;;  %p161_p0 = scmp.lt.u32.totalorder %s157_s5, %s240_s3 }
 0x165   :  { %p163_p1 = pnand %p161_p0, %p158_p13 }
 0x167   :  { %166 = shalt.err (!%p163_p1)
}
 0x168   :  { %103 = dma.vmem_to_hbm [thread:$0]  %s98_s30, 256, %s240_s3, [#allocation4], %s172_s22, %s172_s22, %s173_s23  }
 0x169   :  { %169 = dma.done.wait [#allocation4], 256  }
 0x16a   :  { %170 = vsyncadd [#allocation4], 4294967040 }
 0x16b   :  { %107 = vsyncpa [#allocation3], 1 }
 0x16c   :  { %108 = vsyncpa [#allocation4], 1 }

</bundles_post_ra>
